<compile_context>
chip_gen: v7x
topology: tpu7x:2x2x1
jax: 0.10.0
libtpu: 0.0.40
codegen_flags: <defaults>
</compile_context>

<pallas_src>
import jax
import jax.numpy as jnp
from jax import lax
from jax.experimental import pallas as pl
from jax.experimental.pallas import tpu as pltpu

_UNROLL = 8                               # rows gathered per inner-loop iteration
_VMEM_TABLE_BUDGET = 8 * 1024 * 1024      # conservative; safe even on v7x (64 MiB VMEM)


def ncf_kernel(user_idx_ref, item_idx_ref,   # scalar prefetch (SMEM), (B_pad,) int32
               w_ref, h_ref,                 # full embedding tables, VMEM resident
               w_u_ref, w_v_ref,             # (1, K) halves of the linear weight (VMEM)
               b_ref,                        # (1, 1) bias (SMEM)
               out_ref,                      # (TB, 1) output block (VMEM)
               u_buf, v_buf):                # (TB, K) VMEM staging buffers
    tb = out_ref.shape[0]
    tile_base = pl.program_id(0) * tb

    # ------------------------------------------------------------------
    # Gather TB user rows and TB item rows from the VMEM-resident tables.
    # Pure in-VMEM dynamic-sublane copies: no DMAs, no semaphores, no waits.
    # Unrolled _UNROLL rows per iteration; the SMEM index reads for a chunk are
    # issued before its vector copies so scalar loads and row copies pack.
    # ------------------------------------------------------------------
    def gather_chunk(c, carry):
        base_row = pl.multiple_of(c * _UNROLL, _UNROLL)
        u_idx = [user_idx_ref[tile_base + base_row + j] for j in range(_UNROLL)]
        i_idx = [item_idx_ref[tile_base + base_row + j] for j in range(_UNROLL)]
        for j in range(_UNROLL):
            u_buf[pl.ds(base_row + j, 1), :] = w_ref[pl.ds(u_idx[j], 1), :]
            v_buf[pl.ds(base_row + j, 1), :] = h_ref[pl.ds(i_idx[j], 1), :]
        return carry

    lax.fori_loop(0, tb // _UNROLL, gather_chunk, 0)

    # ------------------------------------------------------------------
    # concat([U, V]) @ w_lin + b  ==  sum(U*w_u, -1) + sum(V*w_v, -1) + b.
    # Exact f32 on VPU (mul) + XLU (lane reduce): no MXU precision emulation and
    # no (TB, K) lane-contraction transpose.  Compute is negligible either way;
    # the binding cost of this kernel is the gather loop above.
    # ------------------------------------------------------------------
    u_dot = jnp.sum(u_buf[...] * w_u_ref[...], axis=1, keepdims=True)   # (TB, 1)
    v_dot = jnp.sum(v_buf[...] * w_v_ref[...], axis=1, keepdims=True)   # (TB, 1)
    logits = u_dot + v_dot + b_ref[0, 0]
    out_ref[...] = jax.nn.sigmoid(logits)


def ncf_forward(x, W, H, w_lin, b_lin, *, tb=512):
    """x: (B, 2) int array [user_idx, item_idx]; returns (B,) float32."""
    B = x.shape[0]
    num_users, K = W.shape
    num_items = H.shape[0]

    # VMEM-resident table path (review: skip manual HBM gather for small tables).
    table_bytes = 4 * K * (num_users + num_items)
    assert table_bytes <= _VMEM_TABLE_BUDGET, (
        "embedding tables too large for the VMEM-resident path")
    # TODO(synk): for tables above the budget, precompute p_u = W @ w_u and
    # p_i = H @ w_v once (fused rewrite) or use a deep-ring HBM row-gather pipeline.

    # Batch tiling: large tiles amortize the ~0.35 us per-grid-step overhead; clamp
    # to the 8-aligned batch so tiny batches do not gather padded garbage rows.
    # Default tb=512 keeps num_tiles >= 2 for B >= 1024 so v7x's two TensorCores
    # can shard the "parallel" batch axis (irrelevant on v5e/v6e: 1 TC).
    b_ceil8 = ((B + 7) // 8) * 8
    tb = max(_UNROLL, min(tb, b_ceil8))
    tb = ((tb + 7) // 8) * 8
    num_tiles = -(-B // tb)
    b_pad = num_tiles * tb

    user_idx = x[:, 0].astype(jnp.int32)
    item_idx = x[:, 1].astype(jnp.int32)
    if b_pad != B:
        user_idx = jnp.pad(user_idx, (0, b_pad - B))     # pad with index 0 (valid)
        item_idx = jnp.pad(item_idx, (0, b_pad - B))
    # NOTE: indices are scalar-prefetched whole (fine up to B ~ 1e5); for larger B,
    # switch to a per-tile SMEM-blocked index input to bound scalar-memory use.

    # Pad table rows to a multiple of 8 (sublane alignment of dynamic row reads).
    def pad_rows(t):
        r = t.shape[0]
        r_pad = ((r + 7) // 8) * 8
        return jnp.pad(t, ((0, r_pad - r), (0, 0))) if r_pad != r else t

    W_p = pad_rows(W.astype(jnp.float32))
    H_p = pad_rows(H.astype(jnp.float32))

    w_u = w_lin[:K].reshape(1, K).astype(jnp.float32)    # acts on U rows
    w_v = w_lin[K:].reshape(1, K).astype(jnp.float32)    # acts on V rows
    bias = b_lin.reshape(1, 1).astype(jnp.float32)

    out = pl.pallas_call(
        ncf_kernel,
        out_shape=jax.ShapeDtypeStruct((b_pad, 1), jnp.float32),
        grid_spec=pltpu.PrefetchScalarGridSpec(
            num_scalar_prefetch=2,                        # user_idx, item_idx -> SMEM
            grid=(num_tiles,),
            in_specs=[
                pl.BlockSpec(W_p.shape, lambda t, *_: (0, 0)),        # W, VMEM resident
                pl.BlockSpec(H_p.shape, lambda t, *_: (0, 0)),        # H, VMEM resident
                pl.BlockSpec((1, K), lambda t, *_: (0, 0)),           # w_u (VMEM)
                pl.BlockSpec((1, K), lambda t, *_: (0, 0)),           # w_v (VMEM)
                pl.BlockSpec(memory_space=pltpu.MemorySpace.SMEM),    # bias (SMEM)
            ],
            out_specs=pl.BlockSpec((tb, 1), lambda t, *_: (t, 0)),
            scratch_shapes=[
                pltpu.VMEM((tb, K), jnp.float32),         # gathered U rows
                pltpu.VMEM((tb, K), jnp.float32),         # gathered V rows
            ],
        ),
        compiler_params=pltpu.CompilerParams(
            dimension_semantics=("parallel",),            # v7x: shard batch over 2 TCs
            vmem_limit_bytes=32 * 1024 * 1024,            # room for resident tables
        ),
    )(user_idx, item_idx, W_p, H_p, w_u, w_v, bias)

    return out[:B, 0]


if __name__ == "__main__":
    num_users, num_items, embedding_k, batch = 16, 24, 4, 8

    key = jax.random.PRNGKey(0)
    k_w, k_h, k_lw, k_lb, k_u, k_i = jax.random.split(key, 6)

    # Deterministic parameter init (shapes from the module's __init__).
    W = jax.random.normal(k_w, (num_users, embedding_k), dtype=jnp.float32)
    H = jax.random.normal(k_h, (num_items, embedding_k), dtype=jnp.float32)
    bound = (2.0 * embedding_k) ** -0.5
    w_lin = jax.random.uniform(k_lw, (2 * embedding_k, 1), jnp.float32, -bound, bound)
    b_lin = jax.random.uniform(k_lb, (1,), jnp.float32, -bound, bound)

    # Input x: column 0 = user indices, column 1 = item indices.
    user_idx = jax.random.randint(k_u, (batch,), 0, num_users, dtype=jnp.int32)
    item_idx = jax.random.randint(k_i, (batch,), 0, num_items, dtype=jnp.int32)
    x = jnp.stack([user_idx, item_idx], axis=1)          # (B, 2) int32

    out = jax.block_until_ready(ncf_forward(x, W, H, w_lin, b_lin))

    # Pure-JAX reference (same semantics as the PyTorch forward, full f32).
    z_ref = jnp.concatenate([W[user_idx], H[item_idx]], axis=1)
    logits_ref = jnp.matmul(z_ref, w_lin, precision=lax.Precision.HIGHEST) + b_lin
    ref = jax.nn.sigmoid(logits_ref).squeeze(-1)

    assert out.shape == (batch,), out.shape
    assert jnp.allclose(out, ref, atol=1e-5), (out, ref)

    print("KERNEL_OK")
</pallas_src>

<mosaic_0001>
module attributes {stable_mosaic.version = 11 : i64} {
  func.func @ncf_kernel(%arg0: i32, %arg1: memref<8xi32, #tpu.memory_space<smem>>, %arg2: memref<8xi32, #tpu.memory_space<smem>>, %arg3: memref<16x4xf32, #tpu.memory_space<vmem>>, %arg4: memref<24x4xf32, #tpu.memory_space<vmem>>, %arg5: memref<1x4xf32, #tpu.memory_space<vmem>>, %arg6: memref<1x4xf32, #tpu.memory_space<vmem>>, %arg7: memref<1x1xf32, #tpu.memory_space<smem>>, %arg8: memref<8x1xf32, #tpu.memory_space<vmem>>, %arg9: memref<8x4xf32, #tpu.memory_space<vmem>>, %arg10: memref<8x4xf32, #tpu.memory_space<vmem>>) attributes {dimension_semantics = [#tpu.dimension_semantics<parallel>], iteration_bounds = array<i64: 1>, scalar_prefetch = 2 : i64, scratch_operands = 2 : i64, tpu.core_type = #tpu.core_type<tc>, window_params = [{pipeline_mode = #tpu.pipeline_mode<synchronous>, transform_indices = @transform_0, window_bounds = array<i64: 16, 4>}, {pipeline_mode = #tpu.pipeline_mode<synchronous>, transform_indices = @transform_1, window_bounds = array<i64: 24, 4>}, {pipeline_mode = #tpu.pipeline_mode<synchronous>, transform_indices = @transform_2, window_bounds = array<i64: 1, 4>}, {pipeline_mode = #tpu.pipeline_mode<synchronous>, transform_indices = @transform_3, window_bounds = array<i64: 1, 4>}, {transform_indices = @transform_4, window_bounds = array<i64: 1, 1>}, {transform_indices = @transform_5, window_bounds = array<i64: 8, 1>}]} {
    %c8_i32 = arith.constant 8 : i32
    %0 = arith.muli %arg0, %c8_i32 : i32
    %c0_i32 = arith.constant 0 : i32
    %c8_i32_0 = arith.constant 8 : i32
    %1 = arith.muli %c0_i32, %c8_i32_0 : i32
    %2 = tpu.assume_multiple %1, 8 : i32
    %3 = arith.addi %0, %2 : i32
    %c0_i32_1 = arith.constant 0 : i32
    %4 = arith.addi %3, %c0_i32_1 : i32
    %5 = arith.index_cast %4 : i32 to index
    %6 = memref.load %arg1[%5] : memref<8xi32, #tpu.memory_space<smem>>
    %7 = arith.addi %0, %2 : i32
    %c1_i32 = arith.constant 1 : i32
    %8 = arith.addi %7, %c1_i32 : i32
    %9 = arith.index_cast %8 : i32 to index
    %10 = memref.load %arg1[%9] : memref<8xi32, #tpu.memory_space<smem>>
    %11 = arith.addi %0, %2 : i32
    %c2_i32 = arith.constant 2 : i32
    %12 = arith.addi %11, %c2_i32 : i32
    %13 = arith.index_cast %12 : i32 to index
    %14 = memref.load %arg1[%13] : memref<8xi32, #tpu.memory_space<smem>>
    %15 = arith.addi %0, %2 : i32
    %c3_i32 = arith.constant 3 : i32
    %16 = arith.addi %15, %c3_i32 : i32
    %17 = arith.index_cast %16 : i32 to index
    %18 = memref.load %arg1[%17] : memref<8xi32, #tpu.memory_space<smem>>
    %19 = arith.addi %0, %2 : i32
    %c4_i32 = arith.constant 4 : i32
    %20 = arith.addi %19, %c4_i32 : i32
    %21 = arith.index_cast %20 : i32 to index
    %22 = memref.load %arg1[%21] : memref<8xi32, #tpu.memory_space<smem>>
    %23 = arith.addi %0, %2 : i32
    %c5_i32 = arith.constant 5 : i32
    %24 = arith.addi %23, %c5_i32 : i32
    %25 = arith.index_cast %24 : i32 to index
    %26 = memref.load %arg1[%25] : memref<8xi32, #tpu.memory_space<smem>>
    %27 = arith.addi %0, %2 : i32
    %c6_i32 = arith.constant 6 : i32
    %28 = arith.addi %27, %c6_i32 : i32
    %29 = arith.index_cast %28 : i32 to index
    %30 = memref.load %arg1[%29] : memref<8xi32, #tpu.memory_space<smem>>
    %31 = arith.addi %0, %2 : i32
    %c7_i32 = arith.constant 7 : i32
    %32 = arith.addi %31, %c7_i32 : i32
    %33 = arith.index_cast %32 : i32 to index
    %34 = memref.load %arg1[%33] : memref<8xi32, #tpu.memory_space<smem>>
    %35 = arith.addi %0, %2 : i32
    %c0_i32_2 = arith.constant 0 : i32
    %36 = arith.addi %35, %c0_i32_2 : i32
    %37 = arith.index_cast %36 : i32 to index
    %38 = memref.load %arg2[%37] : memref<8xi32, #tpu.memory_space<smem>>
    %39 = arith.addi %0, %2 : i32
    %c1_i32_3 = arith.constant 1 : i32
    %40 = arith.addi %39, %c1_i32_3 : i32
    %41 = arith.index_cast %40 : i32 to index
    %42 = memref.load %arg2[%41] : memref<8xi32, #tpu.memory_space<smem>>
    %43 = arith.addi %0, %2 : i32
    %c2_i32_4 = arith.constant 2 : i32
    %44 = arith.addi %43, %c2_i32_4 : i32
    %45 = arith.index_cast %44 : i32 to index
    %46 = memref.load %arg2[%45] : memref<8xi32, #tpu.memory_space<smem>>
    %47 = arith.addi %0, %2 : i32
    %c3_i32_5 = arith.constant 3 : i32
    %48 = arith.addi %47, %c3_i32_5 : i32
    %49 = arith.index_cast %48 : i32 to index
    %50 = memref.load %arg2[%49] : memref<8xi32, #tpu.memory_space<smem>>
    %51 = arith.addi %0, %2 : i32
    %c4_i32_6 = arith.constant 4 : i32
    %52 = arith.addi %51, %c4_i32_6 : i32
    %53 = arith.index_cast %52 : i32 to index
    %54 = memref.load %arg2[%53] : memref<8xi32, #tpu.memory_space<smem>>
    %55 = arith.addi %0, %2 : i32
    %c5_i32_7 = arith.constant 5 : i32
    %56 = arith.addi %55, %c5_i32_7 : i32
    %57 = arith.index_cast %56 : i32 to index
    %58 = memref.load %arg2[%57] : memref<8xi32, #tpu.memory_space<smem>>
    %59 = arith.addi %0, %2 : i32
    %c6_i32_8 = arith.constant 6 : i32
    %60 = arith.addi %59, %c6_i32_8 : i32
    %61 = arith.index_cast %60 : i32 to index
    %62 = memref.load %arg2[%61] : memref<8xi32, #tpu.memory_space<smem>>
    %63 = arith.addi %0, %2 : i32
    %c7_i32_9 = arith.constant 7 : i32
    %64 = arith.addi %63, %c7_i32_9 : i32
    %65 = arith.index_cast %64 : i32 to index
    %66 = memref.load %arg2[%65] : memref<8xi32, #tpu.memory_space<smem>>
    %67 = arith.index_cast %6 : i32 to index
    %c0 = arith.constant 0 : index
    %68 = vector.load %arg3[%67, %c0] : memref<16x4xf32, #tpu.memory_space<vmem>>, vector<1x4xf32>
    %c0_i32_10 = arith.constant 0 : i32
    %69 = arith.addi %2, %c0_i32_10 : i32
    %70 = arith.index_cast %69 : i32 to index
    %c0_11 = arith.constant 0 : index
    %71 = vector.load %arg9[%70, %c0_11] : memref<8x4xf32, #tpu.memory_space<vmem>>, vector<1x4xf32>
    tpu.vector_store %arg9[%70, %c0_11], %68 {strides = array<i32>} : memref<8x4xf32, #tpu.memory_space<vmem>>, vector<1x4xf32>,
    %72 = arith.index_cast %38 : i32 to index
    %c0_12 = arith.constant 0 : index
    %73 = vector.load %arg4[%72, %c0_12] : memref<24x4xf32, #tpu.memory_space<vmem>>, vector<1x4xf32>
    %c0_i32_13 = arith.constant 0 : i32
    %74 = arith.addi %2, %c0_i32_13 : i32
    %75 = arith.index_cast %74 : i32 to index
    %c0_14 = arith.constant 0 : index
    %76 = vector.load %arg10[%75, %c0_14] : memref<8x4xf32, #tpu.memory_space<vmem>>, vector<1x4xf32>
    tpu.vector_store %arg10[%75, %c0_14], %73 {strides = array<i32>} : memref<8x4xf32, #tpu.memory_space<vmem>>, vector<1x4xf32>,
    %77 = arith.index_cast %10 : i32 to index
    %c0_15 = arith.constant 0 : index
    %78 = vector.load %arg3[%77, %c0_15] : memref<16x4xf32, #tpu.memory_space<vmem>>, vector<1x4xf32>
    %c1_i32_16 = arith.constant 1 : i32
    %79 = arith.addi %2, %c1_i32_16 : i32
    %80 = arith.index_cast %79 : i32 to index
    %c0_17 = arith.constant 0 : index
    %81 = vector.load %arg9[%80, %c0_17] : memref<8x4xf32, #tpu.memory_space<vmem>>, vector<1x4xf32>
    tpu.vector_store %arg9[%80, %c0_17], %78 {strides = array<i32>} : memref<8x4xf32, #tpu.memory_space<vmem>>, vector<1x4xf32>,
    %82 = arith.index_cast %42 : i32 to index
    %c0_18 = arith.constant 0 : index
    %83 = vector.load %arg4[%82, %c0_18] : memref<24x4xf32, #tpu.memory_space<vmem>>, vector<1x4xf32>
    %c1_i32_19 = arith.constant 1 : i32
    %84 = arith.addi %2, %c1_i32_19 : i32
    %85 = arith.index_cast %84 : i32 to index
    %c0_20 = arith.constant 0 : index
    %86 = vector.load %arg10[%85, %c0_20] : memref<8x4xf32, #tpu.memory_space<vmem>>, vector<1x4xf32>
    tpu.vector_store %arg10[%85, %c0_20], %83 {strides = array<i32>} : memref<8x4xf32, #tpu.memory_space<vmem>>, vector<1x4xf32>,
    %87 = arith.index_cast %14 : i32 to index
    %c0_21 = arith.constant 0 : index
    %88 = vector.load %arg3[%87, %c0_21] : memref<16x4xf32, #tpu.memory_space<vmem>>, vector<1x4xf32>
    %c2_i32_22 = arith.constant 2 : i32
    %89 = arith.addi %2, %c2_i32_22 : i32
    %90 = arith.index_cast %89 : i32 to index
    %c0_23 = arith.constant 0 : index
    %91 = vector.load %arg9[%90, %c0_23] : memref<8x4xf32, #tpu.memory_space<vmem>>, vector<1x4xf32>
    tpu.vector_store %arg9[%90, %c0_23], %88 {strides = array<i32>} : memref<8x4xf32, #tpu.memory_space<vmem>>, vector<1x4xf32>,
    %92 = arith.index_cast %46 : i32 to index
    %c0_24 = arith.constant 0 : index
    %93 = vector.load %arg4[%92, %c0_24] : memref<24x4xf32, #tpu.memory_space<vmem>>, vector<1x4xf32>
    %c2_i32_25 = arith.constant 2 : i32
    %94 = arith.addi %2, %c2_i32_25 : i32
    %95 = arith.index_cast %94 : i32 to index
    %c0_26 = arith.constant 0 : index
    %96 = vector.load %arg10[%95, %c0_26] : memref<8x4xf32, #tpu.memory_space<vmem>>, vector<1x4xf32>
    tpu.vector_store %arg10[%95, %c0_26], %93 {strides = array<i32>} : memref<8x4xf32, #tpu.memory_space<vmem>>, vector<1x4xf32>,
    %97 = arith.index_cast %18 : i32 to index
    %c0_27 = arith.constant 0 : index
    %98 = vector.load %arg3[%97, %c0_27] : memref<16x4xf32, #tpu.memory_space<vmem>>, vector<1x4xf32>
    %c3_i32_28 = arith.constant 3 : i32
    %99 = arith.addi %2, %c3_i32_28 : i32
    %100 = arith.index_cast %99 : i32 to index
    %c0_29 = arith.constant 0 : index
    %101 = vector.load %arg9[%100, %c0_29] : memref<8x4xf32, #tpu.memory_space<vmem>>, vector<1x4xf32>
    tpu.vector_store %arg9[%100, %c0_29], %98 {strides = array<i32>} : memref<8x4xf32, #tpu.memory_space<vmem>>, vector<1x4xf32>,
    %102 = arith.index_cast %50 : i32 to index
    %c0_30 = arith.constant 0 : index
    %103 = vector.load %arg4[%102, %c0_30] : memref<24x4xf32, #tpu.memory_space<vmem>>, vector<1x4xf32>
    %c3_i32_31 = arith.constant 3 : i32
    %104 = arith.addi %2, %c3_i32_31 : i32
    %105 = arith.index_cast %104 : i32 to index
    %c0_32 = arith.constant 0 : index
    %106 = vector.load %arg10[%105, %c0_32] : memref<8x4xf32, #tpu.memory_space<vmem>>, vector<1x4xf32>
    tpu.vector_store %arg10[%105, %c0_32], %103 {strides = array<i32>} : memref<8x4xf32, #tpu.memory_space<vmem>>, vector<1x4xf32>,
    %107 = arith.index_cast %22 : i32 to index
    %c0_33 = arith.constant 0 : index
    %108 = vector.load %arg3[%107, %c0_33] : memref<16x4xf32, #tpu.memory_space<vmem>>, vector<1x4xf32>
    %c4_i32_34 = arith.constant 4 : i32
    %109 = arith.addi %2, %c4_i32_34 : i32
    %110 = arith.index_cast %109 : i32 to index
    %c0_35 = arith.constant 0 : index
    %111 = vector.load %arg9[%110, %c0_35] : memref<8x4xf32, #tpu.memory_space<vmem>>, vector<1x4xf32>
    tpu.vector_store %arg9[%110, %c0_35], %108 {strides = array<i32>} : memref<8x4xf32, #tpu.memory_space<vmem>>, vector<1x4xf32>,
    %112 = arith.index_cast %54 : i32 to index
    %c0_36 = arith.constant 0 : index
    %113 = vector.load %arg4[%112, %c0_36] : memref<24x4xf32, #tpu.memory_space<vmem>>, vector<1x4xf32>
    %c4_i32_37 = arith.constant 4 : i32
    %114 = arith.addi %2, %c4_i32_37 : i32
    %115 = arith.index_cast %114 : i32 to index
    %c0_38 = arith.constant 0 : index
    %116 = vector.load %arg10[%115, %c0_38] : memref<8x4xf32, #tpu.memory_space<vmem>>, vector<1x4xf32>
    tpu.vector_store %arg10[%115, %c0_38], %113 {strides = array<i32>} : memref<8x4xf32, #tpu.memory_space<vmem>>, vector<1x4xf32>,
    %117 = arith.index_cast %26 : i32 to index
    %c0_39 = arith.constant 0 : index
    %118 = vector.load %arg3[%117, %c0_39] : memref<16x4xf32, #tpu.memory_space<vmem>>, vector<1x4xf32>
    %c5_i32_40 = arith.constant 5 : i32
    %119 = arith.addi %2, %c5_i32_40 : i32
    %120 = arith.index_cast %119 : i32 to index
    %c0_41 = arith.constant 0 : index
    %121 = vector.load %arg9[%120, %c0_41] : memref<8x4xf32, #tpu.memory_space<vmem>>, vector<1x4xf32>
    tpu.vector_store %arg9[%120, %c0_41], %118 {strides = array<i32>} : memref<8x4xf32, #tpu.memory_space<vmem>>, vector<1x4xf32>,
    %122 = arith.index_cast %58 : i32 to index
    %c0_42 = arith.constant 0 : index
    %123 = vector.load %arg4[%122, %c0_42] : memref<24x4xf32, #tpu.memory_space<vmem>>, vector<1x4xf32>
    %c5_i32_43 = arith.constant 5 : i32
    %124 = arith.addi %2, %c5_i32_43 : i32
    %125 = arith.index_cast %124 : i32 to index
    %c0_44 = arith.constant 0 : index
    %126 = vector.load %arg10[%125, %c0_44] : memref<8x4xf32, #tpu.memory_space<vmem>>, vector<1x4xf32>
    tpu.vector_store %arg10[%125, %c0_44], %123 {strides = array<i32>} : memref<8x4xf32, #tpu.memory_space<vmem>>, vector<1x4xf32>,
    %127 = arith.index_cast %30 : i32 to index
    %c0_45 = arith.constant 0 : index
    %128 = vector.load %arg3[%127, %c0_45] : memref<16x4xf32, #tpu.memory_space<vmem>>, vector<1x4xf32>
    %c6_i32_46 = arith.constant 6 : i32
    %129 = arith.addi %2, %c6_i32_46 : i32
    %130 = arith.index_cast %129 : i32 to index
    %c0_47 = arith.constant 0 : index
    %131 = vector.load %arg9[%130, %c0_47] : memref<8x4xf32, #tpu.memory_space<vmem>>, vector<1x4xf32>
    tpu.vector_store %arg9[%130, %c0_47], %128 {strides = array<i32>} : memref<8x4xf32, #tpu.memory_space<vmem>>, vector<1x4xf32>,
    %132 = arith.index_cast %62 : i32 to index
    %c0_48 = arith.constant 0 : index
    %133 = vector.load %arg4[%132, %c0_48] : memref<24x4xf32, #tpu.memory_space<vmem>>, vector<1x4xf32>
    %c6_i32_49 = arith.constant 6 : i32
    %134 = arith.addi %2, %c6_i32_49 : i32
    %135 = arith.index_cast %134 : i32 to index
    %c0_50 = arith.constant 0 : index
    %136 = vector.load %arg10[%135, %c0_50] : memref<8x4xf32, #tpu.memory_space<vmem>>, vector<1x4xf32>
    tpu.vector_store %arg10[%135, %c0_50], %133 {strides = array<i32>} : memref<8x4xf32, #tpu.memory_space<vmem>>, vector<1x4xf32>,
    %137 = arith.index_cast %34 : i32 to index
    %c0_51 = arith.constant 0 : index
    %138 = vector.load %arg3[%137, %c0_51] : memref<16x4xf32, #tpu.memory_space<vmem>>, vector<1x4xf32>
    %c7_i32_52 = arith.constant 7 : i32
    %139 = arith.addi %2, %c7_i32_52 : i32
    %140 = arith.index_cast %139 : i32 to index
    %c0_53 = arith.constant 0 : index
    %141 = vector.load %arg9[%140, %c0_53] : memref<8x4xf32, #tpu.memory_space<vmem>>, vector<1x4xf32>
    tpu.vector_store %arg9[%140, %c0_53], %138 {strides = array<i32>} : memref<8x4xf32, #tpu.memory_space<vmem>>, vector<1x4xf32>,
    %142 = arith.index_cast %66 : i32 to index
    %c0_54 = arith.constant 0 : index
    %143 = vector.load %arg4[%142, %c0_54] : memref<24x4xf32, #tpu.memory_space<vmem>>, vector<1x4xf32>
    %c7_i32_55 = arith.constant 7 : i32
    %144 = arith.addi %2, %c7_i32_55 : i32
    %145 = arith.index_cast %144 : i32 to index
    %c0_56 = arith.constant 0 : index
    %146 = vector.load %arg10[%145, %c0_56] : memref<8x4xf32, #tpu.memory_space<vmem>>, vector<1x4xf32>
    tpu.vector_store %arg10[%145, %c0_56], %143 {strides = array<i32>} : memref<8x4xf32, #tpu.memory_space<vmem>>, vector<1x4xf32>,
    %c1_i32_57 = arith.constant 1 : i32
    %c0_58 = arith.constant 0 : index
    %c0_59 = arith.constant 0 : index
    %147 = vector.load %arg9[%c0_58, %c0_59] : memref<8x4xf32, #tpu.memory_space<vmem>>, vector<8x4xf32>
    %c0_60 = arith.constant 0 : index
    %c0_61 = arith.constant 0 : index
    %148 = vector.load %arg5[%c0_60, %c0_61] : memref<1x4xf32, #tpu.memory_space<vmem>>, vector<1x4xf32>
    %149 = vector.broadcast %148 : vector<1x4xf32> to vector<8x4xf32>
    %150 = arith.mulf %147, %149 : vector<8x4xf32>
    %cst = arith.constant dense<0.000000e+00> : vector<8xf32>
    %151 = vector.multi_reduction <add>, %150, %cst [1] : vector<8x4xf32> to vector<8xf32>
    %152 = vector.shape_cast %151 : vector<8xf32> to vector<8x1xf32>
    %c0_62 = arith.constant 0 : index
    %c0_63 = arith.constant 0 : index
    %153 = vector.load %arg10[%c0_62, %c0_63] : memref<8x4xf32, #tpu.memory_space<vmem>>, vector<8x4xf32>
    %c0_64 = arith.constant 0 : index
    %c0_65 = arith.constant 0 : index
    %154 = vector.load %arg6[%c0_64, %c0_65] : memref<1x4xf32, #tpu.memory_space<vmem>>, vector<1x4xf32>
    %155 = vector.broadcast %154 : vector<1x4xf32> to vector<8x4xf32>
    %156 = arith.mulf %153, %155 : vector<8x4xf32>
    %cst_66 = arith.constant dense<0.000000e+00> : vector<8xf32>
    %157 = vector.multi_reduction <add>, %156, %cst_66 [1] : vector<8x4xf32> to vector<8xf32>
    %158 = vector.shape_cast %157 : vector<8xf32> to vector<8x1xf32>
    %159 = arith.addf %152, %158 : vector<8x1xf32>
    %c0_67 = arith.constant 0 : index
    %c0_68 = arith.constant 0 : index
    %160 = memref.load %arg7[%c0_67, %c0_68] : memref<1x1xf32, #tpu.memory_space<smem>>
    %161 = vector.broadcast %160 : f32 to vector<8x1xf32>
    %162 = arith.addf %159, %161 : vector<8x1xf32>
    %163 = arith.negf %162 : vector<8x1xf32>
    %164 = math.exp %163 : vector<8x1xf32>
    %cst_69 = arith.constant 1.000000e+00 : f32
    %165 = vector.broadcast %cst_69 : f32 to vector<8x1xf32>
    %166 = arith.addf %165, %164 : vector<8x1xf32>
    %167 = arith.divf %165, %166 : vector<8x1xf32>
    %c0_70 = arith.constant 0 : index
    %c0_71 = arith.constant 0 : index
    %168 = vector.load %arg8[%c0_70, %c0_71] : memref<8x1xf32, #tpu.memory_space<vmem>>, vector<8x1xf32>
    tpu.vector_store %arg8[%c0_70, %c0_71], %167 {strides = array<i32>} : memref<8x1xf32, #tpu.memory_space<vmem>>, vector<8x1xf32>,
    return
  }
  func.func @transform_0(%arg0: i32, %arg1: memref<8xi32, #tpu.memory_space<smem>>, %arg2: memref<8xi32, #tpu.memory_space<smem>>) -> (i32, i32) {
    %c0_i32 = arith.constant 0 : i32
    %c0_i32_0 = arith.constant 0 : i32
    %c0_i32_1 = arith.constant 0 : i32
    return %c0_i32, %c0_i32_0 : i32, i32
  }
  func.func @transform_1(%arg0: i32, %arg1: memref<8xi32, #tpu.memory_space<smem>>, %arg2: memref<8xi32, #tpu.memory_space<smem>>) -> (i32, i32) {
    %c0_i32 = arith.constant 0 : i32
    %c0_i32_0 = arith.constant 0 : i32
    %c0_i32_1 = arith.constant 0 : i32
    return %c0_i32, %c0_i32_0 : i32, i32
  }
  func.func @transform_2(%arg0: i32, %arg1: memref<8xi32, #tpu.memory_space<smem>>, %arg2: memref<8xi32, #tpu.memory_space<smem>>) -> (i32, i32) {
    %c0_i32 = arith.constant 0 : i32
    %c0_i32_0 = arith.constant 0 : i32
    %c0_i32_1 = arith.constant 0 : i32
    return %c0_i32, %c0_i32_0 : i32, i32
  }
  func.func @transform_3(%arg0: i32, %arg1: memref<8xi32, #tpu.memory_space<smem>>, %arg2: memref<8xi32, #tpu.memory_space<smem>>) -> (i32, i32) {
    %c0_i32 = arith.constant 0 : i32
    %c0_i32_0 = arith.constant 0 : i32
    %c0_i32_1 = arith.constant 0 : i32
    return %c0_i32, %c0_i32_0 : i32, i32
  }
  func.func @transform_4(%arg0: i32, %arg1: memref<8xi32, #tpu.memory_space<smem>>, %arg2: memref<8xi32, #tpu.memory_space<smem>>) -> (i32, i32) {
    %c0_i32 = arith.constant 0 : i32
    %c0_i32_0 = arith.constant 0 : i32
    %c0_i32_1 = arith.constant 0 : i32
    return %c0_i32, %c0_i32_0 : i32, i32
  }
  func.func @transform_5(%arg0: i32, %arg1: memref<8xi32, #tpu.memory_space<smem>>, %arg2: memref<8xi32, #tpu.memory_space<smem>>) -> (i32, i32) {
    %c0_i32 = arith.constant 0 : i32
    %c0_i32_0 = arith.constant 0 : i32
    return %arg0, %c0_i32 : i32, i32
  }
}

</mosaic_0001>

<bundles_post_ra>
// kernel: tpu_custom_call.1
= control target key start
LH: loop header
LB: loop body
LE: loop exit
PB: predicated region body
PF: predicated region fallthrough
CT: control target
= control target key end

     0   :  { %s384_s0 = inlined_call_operand.vmem [shape: s32[8], index: 0, kind: input, shape index: {}]   ;;  %s385_s2 = inlined_call_operand.vmem [shape: f32[16,4], index: 2, kind: input, shape index: {}]   ;;  %s386_s3 = inlined_call_operand.vmem [shape: f32[24,4], index: 3, kind: input, shape index: {}]   ;;  %s387_s4 = inlined_call_operand.vmem [shape: f32[1,4], index: 4, kind: input, shape index: {}]   ;;  %s388_s5 = inlined_call_operand.vmem [shape: f32[1,4], index: 5, kind: input, shape index: {}]   ;;  %s389_s6 = inlined_call_operand.<no memory space> [shape: f32[1,1], index: 6, kind: input, shape index: {}]   ;;  %s390_s7 = inlined_call_operand.vmem [shape: f32[8,1], index: 7, kind: output, shape index: {}]   ;;  %s391_s1 = inlined_call_operand.vmem [shape: s32[8], index: 1, kind: input, shape index: {}]  }
   0x1   :  { %s12_s26 = sshll.u32 %s384_s0, 4  ;;  %s16_s29 = sshll.u32 %s391_s1, 4  ;;  %s13_s26 = int_to_ptr.vmem [resolvable:$true] %s12_s26  ;;  %s17_s29 = int_to_ptr.vmem [resolvable:$true] %s16_s29 }
   0x2   :  { %s222_s30 = scalar_lea.vmem %s13_s26, 16  ;;  %p227_p1 = scmp.lt.s32.totalorder %s13_s26, %s13_s26 }
   0x3   :  { %p223_p0 = scmp.ne.s32.totalorder %s13_s26, %s222_s30  ;;  %p228_p2 = scmp.lt.s32.totalorder %s222_s30, %s222_s30 }
   0x5   :  { %p229_p3 = por %p228_p2, %p227_p1 }
   0x7   :  { %p230_p4 = pnand %p229_p3, %p223_p0 }
   0x9   :  { %233 = shalt.err (!%p230_p4)  }
   0xa   :  { %s248_s8 = smov [#allocation5]   ;;  %s234_s9 = scalar_lea.vmem %s17_s29, 16 }
   0xb   :  { %15 = dma.vmem_to_smem %s13_s26, 16, %s248_s8, [#allocation4] }
   0xc   :  { %p235_p5 = scmp.ne.s32.totalorder %s17_s29, %s234_s9  ;;  %p239_p6 = scmp.lt.s32.totalorder %s17_s29, %s17_s29 }
   0xd   :  { %p240_p7 = scmp.lt.s32.totalorder %s234_s9, %s234_s9 }
   0xf   :  { %p241_p8 = por %p240_p7, %p239_p6 }
  0x11   :  { %p242_p9 = pnand %p241_p8, %p235_p5 }
  0x13   :  { %245 = shalt.err (!%p242_p9)  }
  0x14   :  { %s249_s0 = smov [#allocation6]  }
  0x15   :  { %19 = dma.vmem_to_smem %s17_s29, 16, %s249_s0, [#allocation4] }
  0x16   :  { %246 = dma.done.wait [#allocation4], 32 }
  0x17   :  { %247 = vsyncadd [#allocation4], 4294967264 }
  0x18   :  { %22 = sfence }
  0x19   :  { %s35_s1 = sld [smem:[#allocation5]]  ;;  %s199_s10 = sld [smem:[#allocation5 + $0x1]]  ;;  %vm60_vm0 = vcmask 24576   ;;  %v213_v12 = vld [vmem:[%s387_s4] ss:$0 sm:$0xff]  ;;  %vm137_vm1 = vcmask 31744   ;;  %v155_v25 = vstv %s389_s6 }
  0x1a   :  { %s200_s11 = sld [smem:[#allocation5 + $0x2]]  ;;  %s201_s12 = sld [smem:[#allocation5 + $0x3]]  ;;  %v214_v20 = vld [vmem:[%s388_s5] ss:$0 sm:$0xff]  ;;  %vm163_vm2 = vcmask 7168  }
  0x1b   :  { %s202_s13 = sld [smem:[#allocation5 + $0x4]]  ;;  %s203_s14 = sld [smem:[#allocation5 + $0x5]] }
  0x1c   :  { %s204_s15 = sld [smem:[#allocation5 + $0x6]]  ;;  %s205_s16 = sld [smem:[#allocation5 + $0x7]] }
  0x1d   :  { %s296_s17 = sld [smem:[#allocation6]]  ;;  %s298_s18 = sld [smem:[#allocation6 + $0x1]] }
  0x1e   :  { %s300_s19 = sld [smem:[#allocation6 + $0x2]]  ;;  %s302_s20 = sld [smem:[#allocation6 + $0x3]] }
  0x1f   :  { %s58_s23 = scalar_lea.vmem %s385_s2, %s35_s1  ;;  %s65_s26 = scalar_lea.vmem %s385_s2, %s199_s10 }
  0x20   :  { %v59_v0 = vld [vmem:[%s58_s23] sm:$0x1]  ;;  %s74_s29 = scalar_lea.vmem %s385_s2, %s200_s11  ;;  %s83_s9 = scalar_lea.vmem %s385_s2, %s201_s12 }
  0x21   :  { %v66_v1 = vld [vmem:[%s65_s26] sm:$0x1]  ;;  %61 = vst.msk [vmem:[#allocation2] sm:$0x1] %vm60_vm0, %v59_v0  ;;  %s92_s10 = scalar_lea.vmem %s385_s2, %s202_s13  ;;  %s101_s23 = scalar_lea.vmem %s385_s2, %s203_s14 }
  0x22   :  { %69 = vst.msk [vmem:[#allocation2 + $0x1] sm:$0x1] %vm60_vm0, %v66_v1  ;;  %v75_v2 = vld [vmem:[%s74_s29] sm:$0x1]  ;;  %s110_s24 = scalar_lea.vmem %s385_s2, %s204_s15  ;;  %s119_s27 = scalar_lea.vmem %s385_s2, %s205_s16 }
  0x23   :  { %v84_v3 = vld [vmem:[%s83_s9] sm:$0x1]  ;;  %78 = vst.msk [vmem:[#allocation2 + $0x2] sm:$0x1] %vm60_vm0, %v75_v2  ;;  %s209_s13 = sld [smem:[#allocation6 + $0x4]]  ;;  %s62_s29 = scalar_lea.vmem %s386_s3, %s296_s17 }
  0x24   :  { %87 = vst.msk [vmem:[#allocation2 + $0x3] sm:$0x1] %vm60_vm0, %v84_v3  ;;  %v93_v4 = vld [vmem:[%s92_s10] sm:$0x1]  ;;  %s210_s15 = sld [smem:[#allocation6 + $0x5]]  ;;  %s211_s30 = sld [smem:[#allocation6 + $0x6]] }
  0x25   :  { %v102_v5 = vld [vmem:[%s101_s23] sm:$0x1]  ;;  %96 = vst.msk [vmem:[#allocation2 + $0x4] sm:$0x1] %vm60_vm0, %v93_v4  ;;  %s212_s2 = sld [smem:[#allocation6 + $0x7]]  ;;  %s70_s9 = scalar_lea.vmem %s386_s3, %s298_s18 }
  0x26   :  { %105 = vst.msk [vmem:[#allocation2 + $0x5] sm:$0x1] %vm60_vm0, %v102_v5  ;;  %v111_v6 = vld [vmem:[%s110_s24] sm:$0x1]  ;;  %s79_s10 = scalar_lea.vmem %s386_s3, %s300_s19  ;;  %s88_s22 = scalar_lea.vmem %s386_s3, %s302_s20 }
  0x27   :  { %v120_v7 = vld [vmem:[%s119_s27] sm:$0x1]  ;;  %114 = vst.msk [vmem:[#allocation2 + $0x6] sm:$0x1] %vm60_vm0, %v111_v6 }
  0x28   :  { %123 = vst.msk [vmem:[#allocation2 + $0x7] sm:$0x1] %vm60_vm0, %v120_v7  ;;  %v63_v8 = vld [vmem:[%s62_s29] sm:$0x1] }
  0x29   :  { %64 = vst.msk [vmem:[#allocation3] sm:$0x1] %vm60_vm0, %v63_v8  ;;  %v71_v9 = vld [vmem:[%s70_s9] sm:$0x1]  ;;  %s97_s19 = scalar_lea.vmem %s386_s3, %s209_s13 }
  0x2a   :  { %73 = vst.msk [vmem:[#allocation3 + $0x1] sm:$0x1] %vm60_vm0, %v71_v9  ;;  %v80_v10 = vld [vmem:[%s79_s10] sm:$0x1]  ;;  %s106_s20 = scalar_lea.vmem %s386_s3, %s210_s15  ;;  %s115_s14 = scalar_lea.vmem %s386_s3, %s211_s30 }
  0x2b   :  { %v89_v11 = vld [vmem:[%s88_s22] sm:$0x1]  ;;  %82 = vst.msk [vmem:[#allocation3 + $0x2] sm:$0x1] %vm60_vm0, %v80_v10  ;;  %s124_s29 = scalar_lea.vmem %s386_s3, %s212_s2 }
  0x2c   :  { %91 = vst.msk [vmem:[#allocation3 + $0x3] sm:$0x1] %vm60_vm0, %v89_v11  ;;  %v98_v13 = vld [vmem:[%s97_s19] sm:$0x1] }
  0x2d   :  { %100 = vst.msk [vmem:[#allocation3 + $0x4] sm:$0x1] %vm60_vm0, %v98_v13  ;;  %v107_v15 = vld [vmem:[%s106_s20] sm:$0x1] }
  0x2e   :  { %v116_v16 = vld [vmem:[%s115_s14] sm:$0x1]  ;;  %109 = vst.msk [vmem:[#allocation3 + $0x5] sm:$0x1] %vm60_vm0, %v107_v15 }
  0x2f   :  { %v128_v14 = vld [vmem:[#allocation2] sm:$0xff]  ;;  %118 = vst.msk [vmem:[#allocation3 + $0x6] sm:$0x1] %vm60_vm0, %v116_v16 }
  0x30   :  { %v136_v17 = vmul.f32 %v213_v12, %v128_v14  ;;  %v125_v18 = vld [vmem:[%s124_s29] sm:$0x1] }
  0x31   :  { %127 = vst.msk [vmem:[#allocation3 + $0x7] sm:$0x1] %vm60_vm0, %v125_v18 }
  0x32   :  { %v138_v19 = vsel %vm137_vm1, %v136_v17, 0.0 }
  0x33   :  { %139 = vadd.xlane.f32.xlu0 %v138_v19 }
  0x38   :  { %v141_v21 = vld [vmem:[#allocation3] sm:$0xff] }
  0x39   :  { %v149_v22 = vmul.f32 %v214_v20, %v141_v21 }
  0x3b   :  { %v150_v23 = vsel %vm137_vm1, %v149_v22, 0.0 }
  0x3c   :  { %151 = vadd.xlane.f32.xlu0 %v150_v23 }
  0xc0   :  { %v140_v24 = vpop.xlane.xlu0 %139 }
  0xc9   :  { %v152_v26 = vpop.xlane.xlu0 %151 }
  0xca   :  { %v153_v27 = vadd.f32 %v152_v26, %v140_v24 }
  0xcc   :  { %v156_v28 = vadd.f32 %v155_v25, %v153_v27 }
  0xce   :  { %v215_v29 = vmul.f32 -1.442695, %v156_v28 }
  0xd0   :  { %218 = vpow2.f32 %v215_v29 }
  0xda   :  { %v219_v30 = vpop.eup %218 }
  0xdb   :  { %v160_v31 = vadd.f32 1.0, %v219_v30 }
  0xdd   :  { %220 = vrcp.f32 %v160_v31 }
  0xe7   :  { %v221_v32 = vpop.eup %220 }
  0xe8   :  { %164 = vst.msk [vmem:[%s390_s7] sm:$0xff] %vm163_vm2, %v221_v32 }

</bundles_post_ra>
